<compile_context>
chip_gen: v7x
topology: tpu7x:2x2x1
jax: 0.10.0
libtpu: 0.0.40
codegen_flags: <defaults>
</compile_context>

<pallas_src>
import functools
from typing import Iterable, List, Optional, Tuple

import numpy as np
import jax
import jax.numpy as jnp
from jax.experimental import pallas as pl
from jax.experimental.pallas import tpu as pltpu


# ----------------------------------------------------------------------------
# Host-side helpers (ported 1:1 from the PyTorch module, deterministic RNG)
# ----------------------------------------------------------------------------
def invert(seq: Iterable[int]) -> List[float]:
    if 0 in seq:
        raise ValueError("Passed iterable cannot contain zero")
    return [1 / x for x in seq]


def hyperbolic(seq: Iterable[int]) -> List[Tuple[float, int]]:
    invert_seq = invert(seq)
    norm_factor = sum(invert_seq)
    probabilities = [x / norm_factor for x in invert_seq]
    return list(zip(probabilities, seq))


def sample(distribution: List[Tuple[float, int]], rng: np.random.Generator) -> int:
    probabilities, values = zip(*distribution)
    return int(rng.choice(values, p=probabilities))


def gen_uniform_values(n: int, rng: np.random.Generator,
                       min_value: float = 0.05) -> List[float]:
    """Generates n values uniformly such that their sum is 1."""
    step = 1 / (n - 1)
    rand_points = np.arange(0, 1, step=step)
    rand_points = [0.0] + [p + rng.uniform(0, step - min_value) for p in rand_points]
    alphas = [1 - rand_points[-1]] + [
        rand_points[i] - rand_points[i - 1] for i in range(1, n)
    ]
    assert sum(alphas) <= 1.00005
    assert sum(alphas) >= 0.99995
    return alphas


# ----------------------------------------------------------------------------
# Pallas kernel: clip mixing only.
#   grid = (batch, L_tiles)      -- both axes "parallel" (no reduction axis)
#   idx_ref:  SMEM (batch, n_slots)   bank row per (sample, slot); prefetch,
#                                     drives the bank-row gather index_maps
#   f_ref:    SMEM (batch, n_slots+1) mix factors; column n_slots = self factor
#   clip_ref: VMEM (1, sub, TW)       the sample's own clip tile
#   bank_j:   VMEM (1, sub, TW)       gathered bank row tile for slot j
#                                     (n_slots unrolled inputs)
#   out_ref:  VMEM (1, sub, TW)       mixed clip tile (input dtype)
# ----------------------------------------------------------------------------
def _mix_clips_kernel(idx_ref, f_ref, clip_ref, *refs, n_slots):
    del idx_ref                       # only used by the index_maps
    bank_refs = refs[:n_slots]
    out_ref = refs[n_slots]
    b = pl.program_id(0)

    # f32 accumulation in registers; single unrolled expression, no pl.when,
    # no cross-step accumulator.  Padded slots have factor 0.
    acc = f_ref[b, n_slots] * clip_ref[0].astype(jnp.float32)
    for j in range(n_slots):
        acc = acc + f_ref[b, j] * bank_refs[j][0].astype(jnp.float32)
    out_ref[0] = acc.astype(out_ref.dtype)


def _choose_tile_w(width: int, sub: int,
                   max_block_elems: int = 512 * 1024, min_tiles: int = 2) -> int:
    """Largest multiple-of-128 divisor of `width` whose (sub, tile) f32 block
    stays under ~2 MiB; if that leaves a single lane tile, prefer a split so
    the "parallel" tile axis has >= min_tiles steps (v7x megacore)."""
    cands = [d for d in range(128, width + 1, 128) if width % d == 0]
    if not cands:
        raise ValueError("clip width must be a multiple of 128")
    cap = max(max_block_elems // sub, 128)
    under = [d for d in cands if d <= cap]
    tile_w = max(under) if under else min(cands)
    if width // tile_w < min_tiles:
        split = [d for d in cands if width // d >= min_tiles and d <= cap]
        if not split:
            split = [d for d in cands if width // d >= min_tiles]
        if split:
            tile_w = max(split)
    return tile_w


def _mixup_impl(params, clips3d, bank3d, targets, target_bank, *,
                sub: int, n_slots: int, tile_w: int, ceil_interval: float):
    """Batched mixup.  params (f32, one H2D transfer) packs per sample:
         [0:n_slots]              bank row indices (as float, exact < 2^24)
         [n_slots:2*n_slots+1]    mix factors (last = self factor)
         [2*n_slots+1]            apply-ceil flag (0 => pass-through sample)
    """
    batch, _, width = clips3d.shape
    length = sub * width

    idx = params[:, :n_slots].astype(jnp.int32)              # (batch, n_slots)
    factors = params[:, n_slots:2 * n_slots + 1]              # (batch, n_slots+1)
    ceil_flag = params[:, 2 * n_slots + 1]                    # (batch,)

    bank_specs = [
        pl.BlockSpec((1, sub, tile_w),
                     lambda b, i, idx_ref, j=j: (idx_ref[b, j], 0, i))
        for j in range(n_slots)
    ]

    kernel = functools.partial(_mix_clips_kernel, n_slots=n_slots)
    mixed3d = pl.pallas_call(
        kernel,
        out_shape=jax.ShapeDtypeStruct((batch, sub, width), clips3d.dtype),
        grid_spec=pltpu.PrefetchScalarGridSpec(
            num_scalar_prefetch=1,                 # idx -> SMEM, drives the gather
            grid=(batch, width // tile_w),
            in_specs=[
                # mix factors: whole (small) array in SMEM
                pl.BlockSpec(memory_space=pltpu.MemorySpace.SMEM),
                # the sample's own clip tile
                pl.BlockSpec((1, sub, tile_w), lambda b, i, idx_ref: (b, 0, i)),
                # one gathered bank-row spec per slot (reduction axis collapsed)
                *bank_specs,
            ],
            out_specs=pl.BlockSpec((1, sub, tile_w), lambda b, i, idx_ref: (b, 0, i)),
        ),
        compiler_params=pltpu.CompilerParams(
            dimension_semantics=("parallel", "parallel"),
            # (n_slots+2) double-buffered ~2 MiB blocks ~= 20 MiB: above v5e's
            # 16 MiB default scoped VMEM, comfortably under v7x's 64 MiB/TC.
            vmem_limit_bytes=48 * 1024 * 1024),
    )(idx, factors, clips3d, *([bank3d] * n_slots))

    mixed_clips = mixed3d.reshape(batch, length)

    # Target mix + ceil quantization: only C elements per sample -> plain JAX.
    gathered_t = jnp.take(target_bank, idx, axis=0).astype(jnp.float32)  # (b, n, C)
    mixed_t = (jnp.einsum("bnc,bn->bc", gathered_t, factors[:, :n_slots])
               + factors[:, n_slots:n_slots + 1] * targets.astype(jnp.float32))
    # utils.ceil(x, interval) == ceil(x / interval) * interval
    quant = jnp.ceil(mixed_t / ceil_interval) * ceil_interval
    mixed_t = jnp.where(ceil_flag[:, None] > 0.5, quant, mixed_t)
    return mixed_clips, mixed_t.astype(targets.dtype)


# ----------------------------------------------------------------------------
# Mixup module equivalent (other clips come from an in-memory bank instead of
# a dataframe; host randomness is a seeded numpy Generator).
# ----------------------------------------------------------------------------
class MixupPallas:

    def __init__(self, clip_bank: jax.Array, target_bank: jax.Array,
                 mixup_p: float = 1.0, ceil_interval: float = 0.1,
                 min_alpha: float = 0.05,
                 num_clips_range: Tuple[int, int] = (1, 3), seed: int = 0):
        clip_bank = jnp.asarray(clip_bank)
        target_bank = jnp.asarray(target_bank)
        bank_size, length = clip_bank.shape
        if bank_size >= (1 << 24):
            raise ValueError("bank too large for float32-packed indices")

        # Sublane split follows dtype packing so packed vregs are full:
        # 8 for 4-byte, 16 for 2-byte (bf16), 32 for 1-byte banks.
        itemsize = np.dtype(clip_bank.dtype).itemsize
        sub = {1: 32, 2: 16, 4: 8}.get(itemsize, 8)
        while sub > 1 and length % (sub * 128) != 0:
            sub //= 2
        if length % (sub * 128) != 0:
            raise ValueError("clip length must be a multiple of 128")
        width = length // sub
        tile_w = _choose_tile_w(width, sub)

        self.bank_size = bank_size
        self.length = length
        self.sub = sub
        self.width = width
        self.tile_w = tile_w
        # One-time reshape of the bank (amortized over all calls).
        self.clip_bank3d = clip_bank.reshape(bank_size, sub, width)
        self.target_bank = target_bank

        self.prob = float(mixup_p)
        self.ceil_interval = float(ceil_interval)
        self.min_alpha = float(min_alpha)
        possible_num_clips = list(range(num_clips_range[0], num_clips_range[1] + 1))
        self.num_clips_distribution = hyperbolic(possible_num_clips)
        # Pad every call to the maximum slot count -> one compiled executable
        # for all N in the configured range.
        self.n_slots = int(num_clips_range[1])
        self.rng = np.random.default_rng(seed)
        self.last_mix = None        # (idxs, factors) of the last single-sample mix
        self.last_batch_mix = None  # list of per-sample draws of the last batch call

        self._mix_fn = jax.jit(functools.partial(
            _mixup_impl, sub=sub, n_slots=self.n_slots, tile_w=tile_w,
            ceil_interval=self.ceil_interval))

    # -- host RNG ------------------------------------------------------------
    def _draw(self) -> Optional[Tuple[List[int], List[float]]]:
        if self.rng.uniform(0, 1) >= self.prob:
            return None
        num_other = sample(self.num_clips_distribution, self.rng)
        idxs = [int(self.rng.integers(0, self.bank_size)) for _ in range(num_other)]
        factors = gen_uniform_values(num_other + 1, self.rng,
                                     min_value=self.min_alpha)
        return idxs, factors

    def _pack(self, draws) -> np.ndarray:
        """Pack per-sample indices / factors / ceil-flag into one f32 array
        (single H2D transfer per call)."""
        batch = len(draws)
        params = np.zeros((batch, 2 * self.n_slots + 2), dtype=np.float32)
        for b, draw in enumerate(draws):
            if draw is None:
                # pass-through sample inside a batch: self factor 1, no ceil
                params[b, 2 * self.n_slots] = 1.0
                continue
            idxs, factors = draw
            k = len(idxs)
            # Padded slots repeat the last real index (factor 0 => no effect;
            # consecutive equal block indices keep the gather DMAs coalesced).
            params[b, :self.n_slots] = float(idxs[-1])
            params[b, :k] = np.asarray(idxs, dtype=np.float32)
            params[b, self.n_slots:self.n_slots + k] = np.asarray(
                factors[:-1], dtype=np.float32)
            params[b, 2 * self.n_slots] = np.float32(factors[-1])
            params[b, 2 * self.n_slots + 1] = 1.0
        return params

    # -- single sample (matches the original forward) -------------------------
    def __call__(self, clip: jax.Array, target: jax.Array):
        draw = self._draw()
        if draw is None:
            self.last_mix = None
            return clip, target
        self.last_mix = draw

        params = jnp.asarray(self._pack([draw]))
        clip3d = jnp.asarray(clip).reshape(1, self.sub, self.width)
        targets = jnp.asarray(target)[None, :]
        mixed_clips, mixed_targets = self._mix_fn(
            params, clip3d, self.clip_bank3d, targets, self.target_bank)
        return mixed_clips[0], mixed_targets[0]

    # -- batched path: many samples per pallas_call ---------------------------
    def mix_batch(self, clips: jax.Array, targets: jax.Array):
        clips = jnp.asarray(clips)
        targets = jnp.asarray(targets)
        batch = clips.shape[0]
        draws = [self._draw() for _ in range(batch)]
        self.last_batch_mix = draws
        params = jnp.asarray(self._pack(draws))
        clips3d = clips.reshape(batch, self.sub, self.width)
        return self._mix_fn(params, clips3d, self.clip_bank3d,
                            targets, self.target_bank)


# ----------------------------------------------------------------------------
if __name__ == "__main__":
    key = jax.random.PRNGKey(0)
    k_clip, k_tgt, k_bank_c, k_bank_t, k_bclip, k_btgt = jax.random.split(key, 6)

    L = 2048   # audio samples per clip (multiple of 1024 -> full 8-sublane layout)
    C = 10     # number of classes
    B = 8      # size of the synthetic "dataset" bank

    clip = jax.random.normal(k_clip, (L,), dtype=jnp.float32)
    target = jax.random.uniform(k_tgt, (C,), dtype=jnp.float32)       # soft labels
    clip_bank = jax.random.normal(k_bank_c, (B, L), dtype=jnp.float32)
    target_bank = jax.random.uniform(k_bank_t, (B, C), dtype=jnp.float32)

    mixup = MixupPallas(clip_bank, target_bank, mixup_p=1.0,
                        ceil_interval=0.1, min_alpha=0.05,
                        num_clips_range=(1, 3), seed=0)

    bank_c_np = np.asarray(clip_bank, dtype=np.float64)
    bank_t_np = np.asarray(target_bank, dtype=np.float64)

    def reference(clip_arr, tgt_arr, draw):
        clip_np = np.asarray(clip_arr, dtype=np.float64)
        tgt_np = np.asarray(tgt_arr, dtype=np.float64)
        if draw is None:
            return clip_np, tgt_np
        idxs, factors = draw
        ref_clip = factors[-1] * clip_np
        ref_tgt = factors[-1] * tgt_np
        for i, f in zip(idxs, factors[:-1]):
            ref_clip = ref_clip + f * bank_c_np[i]
            ref_tgt = ref_tgt + f * bank_t_np[i]
        ref_tgt = np.ceil(ref_tgt / 0.1) * 0.1
        return ref_clip, ref_tgt

    # --- single-sample call (original forward semantics) ---
    mixed_clip, mixed_target = mixup(clip, target)
    jax.block_until_ready((mixed_clip, mixed_target))

    ref_c, ref_t = reference(clip, target, mixup.last_mix)
    np.testing.assert_allclose(np.asarray(mixed_clip), ref_c, rtol=1e-5, atol=1e-5)
    np.testing.assert_allclose(np.asarray(mixed_target), ref_t, rtol=1e-5, atol=1e-4)

    # --- batched call (several samples per pallas_call) ---
    batch = 2
    clips_b = jax.random.normal(k_bclip, (batch, L), dtype=jnp.float32)
    targets_b = jax.random.uniform(k_btgt, (batch, C), dtype=jnp.float32)
    mixed_clips_b, mixed_targets_b = mixup.mix_batch(clips_b, targets_b)
    jax.block_until_ready((mixed_clips_b, mixed_targets_b))

    for b, draw in enumerate(mixup.last_batch_mix):
        ref_c, ref_t = reference(clips_b[b], targets_b[b], draw)
        np.testing.assert_allclose(np.asarray(mixed_clips_b[b]), ref_c,
                                   rtol=1e-5, atol=1e-5)
        np.testing.assert_allclose(np.asarray(mixed_targets_b[b]), ref_t,
                                   rtol=1e-5, atol=1e-4)

    print("KERNEL_OK")
</pallas_src>

<mosaic_0001>
module attributes {stable_mosaic.version = 11 : i64} {
  func.func @_mix_clips_kernel(%arg0: i32, %arg1: i32, %arg2: memref<1x3xi32, #tpu.memory_space<smem>>, %arg3: memref<1x4xf32, #tpu.memory_space<smem>>, %arg4: memref<1x8x128xf32, #tpu.memory_space<vmem>>, %arg5: memref<1x8x128xf32, #tpu.memory_space<vmem>>, %arg6: memref<1x8x128xf32, #tpu.memory_space<vmem>>, %arg7: memref<1x8x128xf32, #tpu.memory_space<vmem>>, %arg8: memref<1x8x128xf32, #tpu.memory_space<vmem>>) attributes {dimension_semantics = [#tpu.dimension_semantics<parallel>, #tpu.dimension_semantics<parallel>], iteration_bounds = array<i64: 1, 2>, scalar_prefetch = 1 : i64, scratch_operands = 0 : i64, tpu.core_type = #tpu.core_type<tc>, window_params = [{transform_indices = @transform_0, window_bounds = array<i64: 1, 4>}, {transform_indices = @transform_1, window_bounds = array<i64: 1, 8, 128>}, {transform_indices = @transform_2, window_bounds = array<i64: 1, 8, 128>}, {transform_indices = @transform_3, window_bounds = array<i64: 1, 8, 128>}, {transform_indices = @transform_4, window_bounds = array<i64: 1, 8, 128>}, {transform_indices = @transform_5, window_bounds = array<i64: 1, 8, 128>}]} {
    %0 = arith.index_cast %arg0 : i32 to index
    %c3 = arith.constant 3 : index
    %1 = memref.load %arg3[%0, %c3] : memref<1x4xf32, #tpu.memory_space<smem>>
    %c0 = arith.constant 0 : index
    %c0_0 = arith.constant 0 : index
    %c0_1 = arith.constant 0 : index
    %2 = vector.load %arg4[%c0, %c0_0, %c0_1] : memref<1x8x128xf32, #tpu.memory_space<vmem>>, vector<1x8x128xf32>
    %3 = vector.shape_cast %2 : vector<1x8x128xf32> to vector<8x128xf32>
    %4 = vector.broadcast %1 : f32 to vector<8x128xf32>
    %5 = arith.mulf %4, %3 : vector<8x128xf32>
    %6 = arith.index_cast %arg0 : i32 to index
    %c0_2 = arith.constant 0 : index
    %7 = memref.load %arg3[%6, %c0_2] : memref<1x4xf32, #tpu.memory_space<smem>>
    %c0_3 = arith.constant 0 : index
    %c0_4 = arith.constant 0 : index
    %c0_5 = arith.constant 0 : index
    %8 = vector.load %arg5[%c0_3, %c0_4, %c0_5] : memref<1x8x128xf32, #tpu.memory_space<vmem>>, vector<1x8x128xf32>
    %9 = vector.shape_cast %8 : vector<1x8x128xf32> to vector<8x128xf32>
    %10 = vector.broadcast %7 : f32 to vector<8x128xf32>
    %11 = arith.mulf %10, %9 : vector<8x128xf32>
    %12 = arith.addf %5, %11 : vector<8x128xf32>
    %13 = arith.index_cast %arg0 : i32 to index
    %c1 = arith.constant 1 : index
    %14 = memref.load %arg3[%13, %c1] : memref<1x4xf32, #tpu.memory_space<smem>>
    %c0_6 = arith.constant 0 : index
    %c0_7 = arith.constant 0 : index
    %c0_8 = arith.constant 0 : index
    %15 = vector.load %arg6[%c0_6, %c0_7, %c0_8] : memref<1x8x128xf32, #tpu.memory_space<vmem>>, vector<1x8x128xf32>
    %16 = vector.shape_cast %15 : vector<1x8x128xf32> to vector<8x128xf32>
    %17 = vector.broadcast %14 : f32 to vector<8x128xf32>
    %18 = arith.mulf %17, %16 : vector<8x128xf32>
    %19 = arith.addf %12, %18 : vector<8x128xf32>
    %20 = arith.index_cast %arg0 : i32 to index
    %c2 = arith.constant 2 : index
    %21 = memref.load %arg3[%20, %c2] : memref<1x4xf32, #tpu.memory_space<smem>>
    %c0_9 = arith.constant 0 : index
    %c0_10 = arith.constant 0 : index
    %c0_11 = arith.constant 0 : index
    %22 = vector.load %arg7[%c0_9, %c0_10, %c0_11] : memref<1x8x128xf32, #tpu.memory_space<vmem>>, vector<1x8x128xf32>
    %23 = vector.shape_cast %22 : vector<1x8x128xf32> to vector<8x128xf32>
    %24 = vector.broadcast %21 : f32 to vector<8x128xf32>
    %25 = arith.mulf %24, %23 : vector<8x128xf32>
    %26 = arith.addf %19, %25 : vector<8x128xf32>
    %c0_12 = arith.constant 0 : index
    %c0_13 = arith.constant 0 : index
    %c0_14 = arith.constant 0 : index
    %27 = vector.load %arg8[%c0_12, %c0_13, %c0_14] : memref<1x8x128xf32, #tpu.memory_space<vmem>>, vector<1x8x128xf32>
    %28 = vector.shape_cast %27 : vector<1x8x128xf32> to vector<8x128xf32>
    %29 = vector.shape_cast %26 : vector<8x128xf32> to vector<1x8x128xf32>
    tpu.vector_store %arg8[%c0_12, %c0_13, %c0_14], %29 {strides = array<i32>} : memref<1x8x128xf32, #tpu.memory_space<vmem>>, vector<1x8x128xf32>,
    return
  }
  func.func @transform_0(%arg0: i32, %arg1: i32, %arg2: memref<1x3xi32, #tpu.memory_space<smem>>) -> (i32, i32) {
    %c0_i32 = arith.constant 0 : i32
    %c0_i32_0 = arith.constant 0 : i32
    %c0_i32_1 = arith.constant 0 : i32
    return %c0_i32, %c0_i32_0 : i32, i32
  }
  func.func @transform_1(%arg0: i32, %arg1: i32, %arg2: memref<1x3xi32, #tpu.memory_space<smem>>) -> (i32, i32, i32) {
    %c0_i32 = arith.constant 0 : i32
    %c0_i32_0 = arith.constant 0 : i32
    return %arg0, %c0_i32, %arg1 : i32, i32, i32
  }
  func.func @transform_2(%arg0: i32, %arg1: i32, %arg2: memref<1x3xi32, #tpu.memory_space<smem>>) -> (i32, i32, i32) {
    %0 = arith.index_cast %arg0 : i32 to index
    %c0 = arith.constant 0 : index
    %1 = memref.load %arg2[%0, %c0] : memref<1x3xi32, #tpu.memory_space<smem>>
    %c0_i32 = arith.constant 0 : i32
    %c0_i32_0 = arith.constant 0 : i32
    return %1, %c0_i32, %arg1 : i32, i32, i32
  }
  func.func @transform_3(%arg0: i32, %arg1: i32, %arg2: memref<1x3xi32, #tpu.memory_space<smem>>) -> (i32, i32, i32) {
    %0 = arith.index_cast %arg0 : i32 to index
    %c1 = arith.constant 1 : index
    %1 = memref.load %arg2[%0, %c1] : memref<1x3xi32, #tpu.memory_space<smem>>
    %c0_i32 = arith.constant 0 : i32
    %c0_i32_0 = arith.constant 0 : i32
    return %1, %c0_i32, %arg1 : i32, i32, i32
  }
  func.func @transform_4(%arg0: i32, %arg1: i32, %arg2: memref<1x3xi32, #tpu.memory_space<smem>>) -> (i32, i32, i32) {
    %0 = arith.index_cast %arg0 : i32 to index
    %c2 = arith.constant 2 : index
    %1 = memref.load %arg2[%0, %c2] : memref<1x3xi32, #tpu.memory_space<smem>>
    %c0_i32 = arith.constant 0 : i32
    %c0_i32_0 = arith.constant 0 : i32
    return %1, %c0_i32, %arg1 : i32, i32, i32
  }
  func.func @transform_5(%arg0: i32, %arg1: i32, %arg2: memref<1x3xi32, #tpu.memory_space<smem>>) -> (i32, i32, i32) {
    %c0_i32 = arith.constant 0 : i32
    %c0_i32_0 = arith.constant 0 : i32
    return %arg0, %c0_i32, %arg1 : i32, i32, i32
  }
}

</mosaic_0001>

<bundles_post_ra>
// kernel: _mixup_impl.1
= control target key start
LH: loop header
LB: loop body
LE: loop exit
PB: predicated region body
PF: predicated region fallthrough
CT: control target
= control target key end

     0   :  { %s1409_s0 = inlined_call_operand.vmem [shape: s32[1,3], index: 0, kind: input, shape index: {}]   ;;  %s1410_s1 = inlined_call_operand.vmem [shape: f32[1,4], index: 1, kind: input, shape index: {}]   ;;  %s1411_s2 = inlined_call_operand.vmem [shape: f32[1,8,256], index: 2, kind: input, shape index: {}]   ;;  %s1412_s3 = inlined_call_operand.hbm [shape: f32[8,8,256], index: 3, kind: input, shape index: {}, may-alias: {3,4,5}]   ;;  %s1413_s4 = inlined_call_operand.hbm [shape: f32[8,8,256], index: 4, kind: input, shape index: {}, may-alias: {3,4,5}]   ;;  %s1414_s5 = inlined_call_operand.hbm [shape: f32[8,8,256], index: 5, kind: input, shape index: {}, may-alias: {3,4,5}]   ;;  %s1415_s6 = inlined_call_operand.vmem [shape: f32[1,8,256], index: 6, kind: output, shape index: {}]  }
   0x1   :  { %1427 = sst [smem:[#allocation18_spill]] %s1410_s1  ;;  %s11_s23 = sshll.u32 %s1409_s0, 4  ;;  %s12_s23 = int_to_ptr.vmem [resolvable:$true] %s11_s23 }
   0x2   :  { %1428 = sst [smem:[#allocation19_spill]] %s1411_s2  ;;  %s778_s24 = scalar_lea.vmem %s12_s23, 16 }
   0x3   :  { %1429 = sst [smem:[#allocation20_spill]] %s1413_s4  ;;  %p779_p0 = scmp.ne.s32.totalorder %s12_s23, %s778_s24 }
   0x4   :  { %1430 = sst [smem:[#allocation21_spill]] %s1414_s5  ;;  %p783_p1 = scmp.lt.s32.totalorder %s12_s23, %s12_s23 }
   0x5   :  { %1431 = sst [smem:[#allocation22_spill]] %s1415_s6  ;;  %p784_p2 = scmp.lt.s32.totalorder %s778_s24, %s778_s24 }
   0x7   :  { %p785_p3 = por %p784_p2, %p783_p1 }
   0x9   :  { %p786_p4 = pnand %p785_p3, %p779_p0 }
   0xb   :  { %789 = shalt.err (!%p786_p4)  }
   0xc   :  { %s1009_s25 = smov [#allocation3]  }
   0xd   :  { %14 = dma.vmem_to_smem %s12_s23, 16, %s1009_s25, [#allocation2] }
   0xe   :  { %943 = dma.done.wait [#allocation2], 16 }
   0xf   :  { %944 = vsyncadd [#allocation2], 4294967280 }
  0x10   :  { %16 = sfence }
  0x11   :  { %17 = vsyncpa [#allocation6], 0 }
  0x12   :  { %18 = vsyncpa [#allocation5], 0 }
  0x13   :  { %20 = vsyncpa [#allocation5 + $0x1], 0 }
  0x14   :  { %21 = vsyncpa [#allocation9], 0 }
  0x15   :  { %23 = vsyncpa [#allocation9 + $0x1], 0  ;;  %s1052_s26 = smov 0   ;;  %s1054_s0 = smov 0  }
  0x16   :  { %s1056_s27 = smov 0   ;;  %s1058_s28 = smov 0  }
  0x17   :  { %s1060_s29 = smov 0   ;;  %s1062_s30 = smov 0  }
  0x18   :  { %s1064_s7 = smov 0   ;;  %s1066_s8 = smov 0  }
  0x19   :  { %s1068_s9 = smov 0   ;;  %s1070_s10 = smov 0  }
  0x1a   :  { %s1072_s11 = smov 0   ;;  %s1074_s12 = smov 0  }
  0x1b LB: > { %1432 = sst [smem:[#allocation16_spill]] %s999_s10  ;;  %s38_s13 = sadd.s32 1, %s1003_s11  ;;  %s1007_s12 = sphi %s1074_s12, %s29_s12   ;;  %s1003_s11 = sphi %s1072_s11, %s1473_s11   ;;  %s999_s10 = sphi %s1070_s10, %s1472_s10   ;;  %s995_s9 = sphi %s1068_s9, %s1471_s9   ;;  %s991_s8 = sphi %s1066_s8, %s1470_s8   ;;  %s987_s7 = sphi %s1064_s7, %s1469_s7   ;;  %s983_s30 = sphi %s1062_s30, %s1468_s30   ;;  %s979_s29 = sphi %s1060_s29, %s1467_s29   ;;  %s975_s28 = sphi %s1058_s28, %s1466_s28   ;;  %s971_s27 = sphi %s1056_s27, %s1465_s27   ;;  %s967_s0 = sphi %s1054_s0, %s1464_s0   ;;  %s963_s26 = sphi %s1052_s26, %s1463_s26  }
  0x1c   : > { %p1420_p5 = scmp.eq.s32.totalorder %s1007_s12, 0  ;;  %p39_p6 = scmp.ge.s32.totalorder %s38_s13, 2 }
  0x1d   : > { %s623_s14 = sld [smem:[#allocation3 + $0x1]]  ;;  %s137_s15 = sadd.s32 1, %s983_s30 }
  0x1e   : > { %p144_p7 = scmp.ne.s32.totalorder %s983_s30, %s979_s29  ;;  %s1475_s13 = smov (%p39_p6, %s38_s13), 0 }
  0x1f   : > { %1433 = sst [smem:[#allocation17_spill]] %s1475_s13  ;;  %s99_s17 = ssub.s32 %s1003_s11, %s1475_s13 }
  0x20   : > { %p1121_p8 = por %p144_p7, %p1420_p5  ;;  %s1129_s18 = sld [smem:[#allocation3 + $0x2]] }
  0x21   : > { %p1419_p10 = scmp.lt.s32.totalorder %s1007_s12, 2  ;;  %s280_s19 = sand.u32 1, %s1007_s12  }
  0x22   : > { %p1133_p11 = scmp.eq.s32.totalorder %s99_s17, 0  ;;  %s282_s21 = sand.u32 1, %s983_s30  }
  0x23   : > { %s633_s22 = sshll.u32 %s282_s21, 3  ;;  %s635_s23 = sshll.u32 %s623_s14, 1 }
  0x24   : > { %s1141_s24 = scalar_select %p1133_p11, %s983_s30, %s137_s15  }
  0x25   : > { %s292_s25 = sadd.s32 %s1003_s11, %s635_s23  ;;  %s1436_s4 = sld [smem:[#allocation20_spill]] }
  0x26   : > { %s636_s6 = sshll.u32 %s292_s25, 7  ;;  %s284_s17 = scalar_lea.vmem [#allocation8], %s633_s22 }
  0x27   : > { %s296_s5 = sshll.u32 %s284_s17, 4  ;;  %p1155_p12 = pnand %p1419_p10, %p1121_p8  ;;  %s1149_s5 = int_to_ptr.vmem [resolvable:$true] %s296_s5 }
  0x28   : > { %s1421_s15 = sadd.s32 4294967295, %s1007_s12   ;;  %s1160_s2 = scalar_lea.sflag [#allocation9], %s280_s19 }
  0x29   : > { %p792_p0 = pneg %p1155_p12 }
  0x2b   : > { %s1147_s10 = scalar_lea.hbm %s1436_s4, %s636_s6  ;;  %s795_s21 = scalar_lea.hbm %s1436_s4, 2048 }
  0x2c   : > { %s790_s6 = scalar_lea.hbm %s1147_s10, 128  ;;  %p796_p3 = scmp.lt.u32.totalorder %s1147_s10, %s1436_s4 }
  0x2d   : > { %p791_p13 = scmp.ne.s32.totalorder %s1147_s10, %s790_s6  ;;  %p797_p4 = scmp.lt.u32.totalorder %s795_s21, %s790_s6 }
  0x2e   : > { %p799_p7 = scmp.lt.u32.totalorder %s790_s6, %s1147_s10 }
  0x2f   : > { %p793_p1 = pnand %p792_p0, %p791_p13  ;;  %p798_p6 = por %p797_p4, %p796_p3 }
  0x31   : > { %p794_p2 = pneg %p793_p1  ;;  %p800_p8 = por %p799_p7, %p798_p6 }
  0x33   : > { %p801_p10 = pnand %p800_p8, %p794_p2 }
  0x35   : > { %804 = shalt.err (!%p801_p10)
}
  0x36   : > { %s805_s19 = scalar_lea.vmem %s1149_s5, 128  ;;  %s1010_s25 = smov [#allocation8]  }
  0x37   : > { %p806_p13 = scmp.ne.s32.totalorder %s1149_s5, %s805_s19  ;;  %s810_s17 = sshll.u32 %s1010_s25, 4  ;;  %s811_s17 = int_to_ptr.vmem [resolvable:$false] %s810_s17 }
  0x38   : > { %s812_s13 = scalar_lea.vmem %s811_s17, 256  ;;  %p813_p9 = scmp.lt.s32.totalorder %s1149_s5, %s811_s17 }
  0x39   : > { %p808_p1 = pnand %p806_p13, %p792_p0  ;;  %p814_p3 = scmp.lt.s32.totalorder %s812_s13, %s805_s19 }
  0x3b   : > { %p809_p5 = pneg %p808_p1  ;;  %p815_p4 = por %p814_p3, %p813_p9 }
  0x3d   : > { %p816_p6 = pnand %p815_p4, %p809_p5 }
  0x3f   : > { %819 = shalt.err (!%p816_p6)
}
  0x40   : > { %673 = dma.hbm_to_vmem [thread:$0]  (!%p1155_p12), %s1147_s10, 128, %s1149_s5, %s1160_s2  }
  0x41   : > { %p1190_p10 = scmp.eq.s32.totalorder %s1421_s15, 0  ;;  %p627_p5 = scmp.ge.s32.totalorder %s1007_s12, 1 }
  0x42   : > { %p223_p9 = scmp.lt.s32.totalorder %s1007_s12, 3  ;;  %p1439_p0 = scmp.ne.s32.totalorder %s979_s29, %s975_s28 }
  0x43   : > { %s1438_s6 = scalar_select %p1190_p10, 1, 0 }
  0x44   : > { %p1201_p2 = por %p1439_p0, %p1190_p10  ;;  %s1441_s1 = sld [smem:[#allocation18_spill]] }
  0x45   : > { %p1208_p12 = pnand %p627_p5, %p223_p9  ;;  %s95_s28 = sld [smem:[#allocation3]] }
  0x46   : > { %s1440_s14 = scalar_select %p1201_p2, 1, 0 }
  0x47   : > { %s1442_s5 = scalar_select %p1208_p12, 1, 0 }
  0x48   : > { %p663_p7 = pneg %p1208_p12  ;;  %s103_s23 = sadd.s32 1, %s995_s9 }
  0x4a   : > { %s236_s22 = sshll.u32 %s1441_s1, 4  ;;  %p1216_p8 = pnand %p663_p7, %p1190_p10  ;;  %s237_s22 = int_to_ptr.vmem [resolvable:$true] %s236_s22 }
  0x4b   : > { %s820_s19 = scalar_lea.vmem %s237_s22, 16  ;;  %p828_p6 = scmp.lt.s32.totalorder %s237_s22, %s237_s22 }
  0x4c   : > { %p821_p13 = scmp.ne.s32.totalorder %s237_s22, %s820_s19  ;;  %p822_p1 = pneg %p1216_p8 }
  0x4d   : > { %p829_p5 = scmp.lt.s32.totalorder %s820_s19, %s820_s19 }
  0x4e   : > { %p823_p3 = pnand %p822_p1, %p821_p13 }
  0x4f   : > { %p830_p9 = por %p829_p5, %p828_p6 }
  0x50   : > { %p824_p4 = pneg %p823_p3 }
  0x52   : > { %p831_p0 = pnand %p830_p9, %p824_p4 }
  0x54   : > { %834 = shalt.err (!%p831_p0)
}
  0x55   : > { %s1011_s25 = smov [#allocation4]   ;;  %p110_p7 = scmp.ne.s32.totalorder %s995_s9, %s991_s8 }
  0x56   : > { %666 = dma.vmem_to_smem (!%p1216_p8), %s237_s22, 16, %s1011_s25, [#allocation6]  }
  0x57   : > { %p116_p13 = scmp.ne.s32.totalorder %s991_s8, %s987_s7  ;;  %s258_s17 = sand.u32 1, %s995_s9  }
  0x58   : > { %p1444_p1 = scmp.eq.s32.totalorder %s1007_s12, 0  ;;  %s630_s16 = sshll.u32 %s258_s17, 3 }
  0x59   : > { %p1234_p4 = por %p1190_p10, %p116_p13  ;;  %s631_s21 = sshll.u32 %s95_s28, 1 }
  0x5a   : > { %p112_p3 = por %p1444_p1, %p110_p7  ;;  %s262_s10 = scalar_lea.vmem [#allocation7], %s630_s16 }
  0x5b   : > { %s1445_s13 = scalar_select %p1234_p4, 1, 0 }
  0x5c   : > { %s273_s19 = sshll.u32 %s262_s10, 4  ;;  %s269_s1 = sadd.s32 %s1003_s11, %s631_s21  ;;  %s1244_s19 = int_to_ptr.vmem [resolvable:$true] %s273_s19 }
  0x5d   : > { %s1241_s15 = scalar_select %p1133_p11, %s995_s9, %s103_s23  }
  0x5e   : > { %s632_s22 = sshll.u32 %s269_s1, 7  ;;  %p1446_p8 = scmp.lt.s32.totalorder %s1007_s12, 2 }
  0x5f   : > { %s1255_s28 = scalar_lea.hbm %s1412_s3, %s632_s22  ;;  %s259_s23 = scalar_lea.sflag [#allocation5], %s258_s17 }
  0x60   : > { %p1248_p6 = pnand %p1446_p8, %p112_p3  ;;  %s835_s16 = scalar_lea.hbm %s1255_s28, 128 }
  0x61   : > { %p836_p5 = scmp.ne.s32.totalorder %s1255_s28, %s835_s16  ;;  %s840_s4 = scalar_lea.hbm %s1412_s3, 2048 }
  0x62   : > { %p837_p9 = pneg %p1248_p6  ;;  %p841_p13 = scmp.lt.u32.totalorder %s1255_s28, %s1412_s3 }
  0x63   : > { %p842_p1 = scmp.lt.u32.totalorder %s840_s4, %s835_s16  ;;  %p844_p8 = scmp.lt.u32.totalorder %s835_s16, %s1255_s28 }
  0x64   : > { %p838_p0 = pnand %p837_p9, %p836_p5 }
  0x65   : > { %p843_p3 = por %p842_p1, %p841_p13 }
  0x66   : > { %p839_p7 = pneg %p838_p0 }
  0x67   : > { %p845_p2 = por %p844_p8, %p843_p3 }
  0x69   : > { %p846_p4 = pnand %p845_p2, %p839_p7 }
  0x6b   : > { %849 = shalt.err (!%p846_p4)
}
  0x6c   : > { %s850_s17 = scalar_lea.vmem %s1244_s19, 128  ;;  %s1012_s25 = smov [#allocation7]  }
  0x6d   : > { %p851_p5 = scmp.ne.s32.totalorder %s1244_s19, %s850_s17  ;;  %s855_s1 = sshll.u32 %s1012_s25, 4  ;;  %s856_s1 = int_to_ptr.vmem [resolvable:$false] %s855_s1 }
  0x6e   : > { %s857_s21 = scalar_lea.vmem %s856_s1, 256  ;;  %p858_p10 = scmp.lt.s32.totalorder %s1244_s19, %s856_s1 }
  0x6f   : > { %p853_p0 = pnand %p851_p5, %p837_p9  ;;  %p859_p13 = scmp.lt.s32.totalorder %s857_s21, %s850_s17 }
  0x71   : > { %p854_p12 = pneg %p853_p0  ;;  %p860_p1 = por %p859_p13, %p858_p10 }
  0x73   : > { %p861_p3 = pnand %p860_p1, %p854_p12 }
  0x75   : > { %864 = shalt.err (!%p861_p3)
}
  0x76   : > { %670 = dma.hbm_to_vmem [thread:$0]  (!%p1248_p6), %s1255_s28, 128, %s1244_s19, %s259_s23  }
  0x77   : > { %s171_s16 = sadd.s32 1, %s971_s27  ;;  %p178_p10 = scmp.ne.s32.totalorder %s971_s27, %s967_s0 }
  0x78   : > { %s1286_s4 = scalar_select %p1133_p11, %s971_s27, %s171_s16  }
  0x79   : > { %p184_p2 = scmp.ne.s32.totalorder %s967_s0, %s963_s26  ;;  %s305_s7 = sand.u32 1, %s971_s27  }
  0x7a   : > { %s639_s10 = sshll.u32 %s1129_s18, 1  ;;  %p1448_p12 = scmp.eq.s32.totalorder %s1007_s12, 0 }
  0x7b   : > { %p1449_p9 = scmp.ne.s32.totalorder %s1438_s6, 0  ;;  %s637_s17 = sshll.u32 %s305_s7, 3 }
  0x7c   : > { %p180_p4 = por %p178_p10, %p1448_p12  ;;  %s315_s25 = sadd.s32 %s1003_s11, %s639_s10 }
  0x7d   : > { %p1298_p7 = por %p184_p2, %p1449_p9  ;;  %s640_s1 = sshll.u32 %s315_s25, 7 }
  0x7e   : > { %s1451_s23 = sld [smem:[#allocation21_spill]]  ;;  %s307_s26 = scalar_lea.vmem [#allocation10], %s637_s17 }
  0x7f   : > { %s319_s18 = sshll.u32 %s307_s26, 4  ;;  %p1452_p11 = scmp.lt.s32.totalorder %s1007_s12, 2  ;;  %s1308_s18 = int_to_ptr.vmem [resolvable:$true] %s319_s18 }
  0x81   : > { %p1312_p6 = pnand %p1452_p11, %p180_p4 }
  0x83   : > { %p867_p5 = pneg %p1312_p6 }
  0x84   : > { %s1306_s20 = scalar_lea.hbm %s1451_s23, %s640_s1  ;;  %s870_s17 = scalar_lea.hbm %s1451_s23, 2048 }
  0x85   : > { %s865_s16 = scalar_lea.hbm %s1306_s20, 128  ;;  %p871_p1 = scmp.lt.u32.totalorder %s1306_s20, %s1451_s23 }
  0x86   : > { %p866_p8 = scmp.ne.s32.totalorder %s1306_s20, %s865_s16  ;;  %p872_p3 = scmp.lt.u32.totalorder %s870_s17, %s865_s16 }
  0x87   : > { %p874_p2 = scmp.lt.u32.totalorder %s865_s16, %s1306_s20 }
  0x88   : > { %p868_p0 = pnand %p867_p5, %p866_p8  ;;  %p873_p10 = por %p872_p3, %p871_p1 }
  0x8a   : > { %p869_p13 = pneg %p868_p0  ;;  %p875_p12 = por %p874_p2, %p873_p10 }
  0x8c   : > { %p876_p4 = pnand %p875_p12, %p869_p13 }
  0x8e   : > { %879 = shalt.err (!%p876_p4)
}
  0x8f   : > { %s880_s19 = scalar_lea.vmem %s1308_s18, 128  ;;  %s1013_s28 = smov [#allocation10]  }
  0x90   : > { %p881_p9 = scmp.ne.s32.totalorder %s1308_s18, %s880_s19  ;;  %s885_s26 = sshll.u32 %s1013_s28, 4  ;;  %s886_s26 = int_to_ptr.vmem [resolvable:$false] %s885_s26 }
  0x91   : > { %s887_s7 = scalar_lea.vmem %s886_s26, 256  ;;  %p888_p0 = scmp.lt.s32.totalorder %s1308_s18, %s886_s26 }
  0x92   : > { %p883_p11 = pnand %p881_p9, %p867_p5  ;;  %p889_p1 = scmp.lt.s32.totalorder %s887_s7, %s880_s19 }
  0x94   : > { %p884_p8 = pneg %p883_p11  ;;  %p890_p3 = por %p889_p1, %p888_p0 }
  0x96   : > { %p891_p10 = pnand %p890_p3, %p884_p8 }
  0x98   : > { %894 = shalt.err (!%p891_p10)
}
  0x99   : > { %676 = dma.hbm_to_vmem [thread:$0]  (!%p1312_p6), %s1306_s20, 128, %s1308_s18, %s1160_s2  }
  0x9a   : > { %p1454_p13 = scmp.ne.s32.totalorder %s1442_s5, 0 }
  0x9b   : > { %p1455_p5 = scmp.ne.s32.totalorder (!%p1454_p13), %s1438_s6, 0 }
  0x9c   : > { %328 = sbr.rel (%p1454_p13) target bundleno = 201 (0xc9), region = 40 }
  0xa3   : > { %946 = dma.done.wait (%p1455_p5), [#allocation6], 16  }
  0xa4   : > { %948 = vsyncadd (%p1455_p5), [#allocation6], 4294967280  ;;  %s334_s16 = sand.u32 1, %s991_s8   ;;  %p1456_p2 = scmp.ne.s32.totalorder %s1445_s13, 0 }
  0xa5   : > { %s643_s10 = sshll.u32 %s334_s16, 3  ;;  %s335_s17 = scalar_lea.sflag [#allocation5], %s334_s16 }
  0xa6   : > { %s338_s25 = scalar_lea.vmem [#allocation7], %s643_s10 }
  0xa7   : > { %950 = dma.done.wait (%p1456_p2), %s335_s17, 128  }
  0xa8   : > { %952 = vsyncadd (%p1456_p2), %s335_s17, 4294967168  ;;  %s1457_s2 = sadd.s32 4294967295, %s1007_s12   ;;  %s345_s20 = sand.u32 1, %s979_s29  }
  0xa9   : > { %s343_s5 = sand.u32 1, %s1457_s2   ;;  %s644_s18 = sshll.u32 %s345_s20, 3 }
  0xaa   : > { %s344_s6 = scalar_lea.sflag [#allocation9], %s343_s5  ;;  %s347_s21 = scalar_lea.vmem [#allocation8], %s644_s18 }
  0xab   : > { %p1458_p6 = scmp.ne.s32.totalorder %s1440_s14, 0 }
  0xad   : > { %954 = dma.done.wait (%p1458_p6), %s344_s6, 128  }
  0xae   : > { %956 = vsyncadd (%p1458_p6), %s344_s6, 4294967168  ;;  %s354_s1 = sand.u32 1, %s967_s0  }
  0xaf   : > { %s645_s19 = sshll.u32 %s354_s1, 3 }
  0xb0   : > { %s356_s13 = scalar_lea.vmem [#allocation10], %s645_s19 }
  0xb1   : > { %958 = dma.done.wait (%p1298_p7), %s344_s6, 128  }
  0xb2   : > { %960 = vsyncadd (%p1298_p7), %s344_s6, 4294967168 }
  0xb3   : > { %361 = sfence }
  0xb4   : > { %s1459_s28 = sld [smem:[#allocation16_spill]]  ;;  %s648_s26 = sld [smem:[#allocation4 + $0x3]]  ;;  %v436_v0 = vld [vmem:[%s338_s25] sm:$0xff]  ;;  %v442_v1 = vld [vmem:[%s347_s21] sm:$0xff] }
  0xb5   : > { %s435_s7 = sld [smem:[#allocation4]]  ;;  %s649_s16 = sld [smem:[#allocation4 + $0x1]]  ;;  %v448_v7 = vld [vmem:[%s356_s13] sm:$0xff] }
  0xb6   : > { %s650_s14 = sld [smem:[#allocation4 + $0x2]]  ;;  %s1460_s5 = sld [smem:[#allocation19_spill]] }
  0xb7   : > { %s1461_s6 = sld [smem:[#allocation22_spill]] }
  0xba   : > { %p407_p12 = scmp.lt.s32.totalorder %s1459_s28, 1  ;;  %v433_v3 = vstv %s648_s26 }
  0xbb   : > { %v437_v5 = vstv %s435_s7  ;;  %v443_v6 = vstv %s649_s16 }
  0xbc   : > { %s1477_s28 = smov (!%p407_p12, %s1459_s28), 1  ;;  %v438_v8 = vmul.f32 %v437_v5, %v436_v0  ;;  %v444_v9 = vmul.f32 %v443_v6, %v442_v1  ;;  %v449_v10 = vstv %s650_s14 }
  0xbd   : > { %s646_s10 = sshll.u32 %s1477_s28, 3  ;;  %v450_v12 = vmul.f32 %v449_v10, %v448_v7 }
  0xbe   : > { %s412_s20 = scalar_lea.vmem %s1460_s5, %s646_s10  ;;  %s428_s1 = scalar_lea.vmem %s1461_s6, %s646_s10 }
  0xbf   : > { %v432_v2 = vld [vmem:[%s412_s20] sm:$0xff] }
  0xc0   : > { %v434_v4 = vmul.f32 %v433_v3, %v432_v2 }
  0xc2   : > { %v439_v11 = vadd.f32 %v438_v8, %v434_v4 }
  0xc4   : > { %v445_v13 = vadd.f32 %v444_v9, %v439_v11 }
  0xc6   : > { %v451_v14 = vadd.f32 %v450_v12, %v445_v13 }
  0xc8   : > { %452 = vst [vmem:[%s428_s1] sm:$0xff] %v451_v14 }
  0xc9 PF: > { %s29_s12 = sadd.s32 1, %s1007_s12   ;;  %s1462_s25 = sld [smem:[#allocation17_spill]] }
  0xca   : > { %p26_p7 = scmp.ge.s32.totalorder %s29_s12, 4   ;;  %s1463_s26 = smov %s967_s0 }
  0xcb   : > { %s1464_s0 = smov %s971_s27  ;;  %s1465_s27 = smov %s1286_s4 }
  0xcc   : > { %s1466_s28 = smov %s979_s29  ;;  %s1467_s29 = smov %s983_s30 }
  0xcd   : > { %s1468_s30 = smov %s1141_s24  ;;  %s1469_s7 = smov %s991_s8 }
  0xce   : > { %s1470_s8 = smov %s995_s9  ;;  %s1471_s9 = smov %s1241_s15 }
  0xcf   : > { %s1472_s10 = smov %s1003_s11  ;;  %s1473_s11 = smov %s1462_s25 }
  0xd0   :  { %28 = sbr.rel (!%p26_p7) target bundleno = 27 (0x1b), region = 112 }
  0xd7   :  { %480 = vsyncpa [#allocation5], 1 }
  0xd8   :  { %482 = vsyncpa [#allocation5 + $0x1], 1 }
  0xd9   :  { %483 = vsyncpa [#allocation9], 1 }
  0xda   :  { %485 = vsyncpa [#allocation9 + $0x1], 1 }
  0xdb   :  { %486 = vsyncpa [#allocation6], 1 }
  0xdc   :  { %488 = vsyncpa [#allocation6 + $0x1], 1 }

</bundles_post_ra>
